<compile_context>
chip_gen: v7x
topology: tpu7x:2x2x1
jax: 0.10.0
libtpu: 0.0.40
codegen_flags: <defaults>
</compile_context>

<pallas_src>
import functools

import jax
import jax.numpy as jnp
from jax.experimental import pallas as pl
from jax.experimental.pallas import tpu as pltpu


def _round_up(x: int, m: int) -> int:
    return (x + m - 1) // m * m


def _cdiv(a: int, b: int) -> int:
    return (a + b - 1) // b


# ----------------------------------------------------------------------------
# Kernels
# ----------------------------------------------------------------------------
def _linear_kernel_scratch(x_ref, w_ref, b_ref, o_ref, acc_ref, *,
                           sigmoid_output: bool):
    """Variant with a f32 VMEM accumulator (used when out dtype != float32)."""
    k = pl.program_id(2)

    @pl.when(k == 0)
    def _init():
        acc_ref[...] = jnp.zeros_like(acc_ref)

    acc_ref[...] += jnp.dot(x_ref[...], w_ref[...],
                            preferred_element_type=jnp.float32)

    @pl.when(k == pl.num_programs(2) - 1)
    def _finalize():
        y = acc_ref[...] + b_ref[...]          # (tm,tn) + (1,tn), f32
        if sigmoid_output:
            y = jax.nn.sigmoid(y)              # EUP; hides under last MXU tile
        o_ref[...] = y.astype(o_ref.dtype)


def _linear_kernel_inplace(x_ref, w_ref, b_ref, o_ref, *,
                           sigmoid_output: bool):
    """f32 output: accumulate directly into the resident output tile."""
    k = pl.program_id(2)

    @pl.when(k == 0)
    def _init():
        o_ref[...] = jnp.zeros_like(o_ref)

    o_ref[...] += jnp.dot(x_ref[...], w_ref[...],
                          preferred_element_type=jnp.float32)

    @pl.when(k == pl.num_programs(2) - 1)
    def _finalize():
        y = o_ref[...] + b_ref[...]
        if sigmoid_output:
            y = jax.nn.sigmoid(y)
        o_ref[...] = y


# ----------------------------------------------------------------------------
# Weight-stationary wrapper (equivalent of the PyTorch SingleLinear module)
# ----------------------------------------------------------------------------
class SingleLinearPallas:
    """y = x @ weight_t + bias (optionally sigmoid), Pallas TPU backend.

    weight_t: (K, N) = transpose of torch nn.Linear weight (output_dim, input_dim)
    bias:     (N,)
    """

    def __init__(self, weight_t, bias, *, sigmoid_output: bool = False,
                 use_bf16_matmul: bool = True,
                 tile_m: int = 512, tile_n: int = 512, tile_k: int | None = None,
                 vmem_budget_bytes: int = 24 * 1024 * 1024,
                 buffer_depth: int = 2,
                 ensure_two_parallel_tiles: bool = True,
                 xla_fallback_flops: int = 2 * 1024 * 1024):
        K, N = weight_t.shape
        assert bias.shape == (N,), bias.shape
        self.K, self.N = K, N
        self.sigmoid_output = sigmoid_output
        self.buffer_depth = buffer_depth
        self.ensure_two_parallel_tiles = ensure_two_parallel_tiles
        self.xla_fallback_flops = xla_fallback_flops

        # MXU input dtype (f32 accumulation always kept in-kernel).
        self.in_dtype = jnp.bfloat16 if use_bf16_matmul else jnp.float32
        self.in_bytes = jnp.dtype(self.in_dtype).itemsize
        # bf16 packs two rows per sublane -> minimum (16,128) tile.
        self.sub_align = 16 if self.in_bytes < 4 else 8

        if tile_k is None:
            tile_k = 2048 if self.in_bytes < 4 else 1024

        # Lane-dense tile sizes (tn/tk multiples of 128; prefer >=256 for the
        # 2x256^2 MXU on v6e/v7x via the large defaults above).
        tm = max(_round_up(tile_m, self.sub_align), self.sub_align)
        tn = _round_up(min(tile_n, _round_up(N, 128)), 128)
        tk = _round_up(min(tile_k, _round_up(K, 128)), 128)

        # Cap the (double-buffered) working set by an explicit VMEM budget so
        # the same config is safe on v7x (64 MiB/TC).  Worst case assumed:
        # f32 output + f32 scratch accumulator.
        def _need(tm_, tn_, tk_):
            return (2 * (tm_ * tk_ + tk_ * tn_) * self.in_bytes   # x, w (2x buf)
                    + 2 * tn_ * 4                                  # bias
                    + 2 * tm_ * tn_ * 4                            # output (2x buf)
                    + tm_ * tn_ * 4)                               # f32 scratch

        while _need(tm, tn, tk) > vmem_budget_bytes:
            if tk > 512:
                tk = _round_up(tk // 2, 128)
            elif tn > 256:
                tn = _round_up(tn // 2, 128)
            elif tm > 2 * self.sub_align:
                tm = _round_up(tm // 2, self.sub_align)
            else:
                break

        self.tile_m, self.tn, self.tk = tm, tn, tk
        self.Np = _round_up(N, tn)
        self.Kp = _round_up(K, tk)

        # ---- One-time weight / bias preparation (hoisted out of call path) --
        wp = weight_t.astype(self.in_dtype)
        if (self.Kp, self.Np) != (K, N):
            wp = jnp.zeros((self.Kp, self.Np), self.in_dtype).at[:K, :N].set(wp)
        self.wp = wp
        bp = bias.astype(jnp.float32).reshape(1, N)
        if self.Np != N:
            bp = jnp.zeros((1, self.Np), jnp.float32).at[:, :N].set(bp)
        self.bp = bp

        # Unpadded f32 copies for the tiny-shape XLA fallback.
        self.weight_t_f32 = weight_t.astype(jnp.float32)
        self.bias_f32 = bias.astype(jnp.float32)

    # ------------------------------------------------------------------
    def __call__(self, x, *, force_pallas: bool = False):
        orig_shape = x.shape
        assert orig_shape[-1] == self.K, (orig_shape, self.K)
        x2d = x.reshape(-1, self.K)
        M = x2d.shape[0]
        out_dtype = x.dtype
        out_bytes = jnp.dtype(out_dtype).itemsize

        # ---- small-shape escape hatch: XLA wins outright there -----------
        if not force_pallas and 2 * M * self.K * self.N < self.xla_fallback_flops:
            y = x2d.astype(jnp.float32) @ self.weight_t_f32 + self.bias_f32
            if self.sigmoid_output:
                y = jax.nn.sigmoid(y)
            return y.astype(out_dtype).reshape(*orig_shape[:-1], self.N)

        # ---- M-tile selection --------------------------------------------
        tm = min(self.tile_m, _round_up(M, self.sub_align))
        Mp = _round_up(M, tm)
        # Keep >=2 parallel tiles so v7x's two TensorCores both get work.
        if (self.ensure_two_parallel_tiles
                and (Mp // tm) * (self.Np // self.tn) < 2):
            tm_half = _round_up(_cdiv(M, 2), self.sub_align)
            if tm_half < tm:
                tm = tm_half
                Mp = _round_up(M, tm)

        tn, tk, Np, Kp = self.tn, self.tk, self.Np, self.Kp
        grid = (Mp // tm, Np // tn, Kp // tk)
        gm, gn, _ = grid

        # ---- activation cast / pad (skipped when already aligned) ---------
        xk = x2d.astype(self.in_dtype)
        if (Mp, Kp) != (M, self.K):
            xk = jnp.zeros((Mp, Kp), self.in_dtype).at[:M, :self.K].set(xk)

        # ---- kernel variant & scratch -------------------------------------
        use_inplace = (out_dtype == jnp.float32)
        if use_inplace:
            kernel = functools.partial(_linear_kernel_inplace,
                                       sigmoid_output=self.sigmoid_output)
            scratch_shapes = []
        else:
            kernel = functools.partial(_linear_kernel_scratch,
                                       sigmoid_output=self.sigmoid_output)
            scratch_shapes = [pltpu.VMEM((tm, tn), jnp.float32)]

        # ---- VMEM limit sized to actual need (v7x-safe) --------------------
        need = (2 * (tm * tk + tk * tn) * self.in_bytes
                + 2 * tn * 4
                + 2 * tm * tn * out_bytes
                + (0 if use_inplace else tm * tn * 4))
        vmem_limit = min(max(need * 3 // 2 + (4 << 20), 32 << 20), 60 << 20)

        # ---- honest cost estimate (tile re-reads included) -----------------
        bytes_accessed = (Mp * Kp * self.in_bytes * gn      # x re-read per N-tile
                          + Kp * Np * self.in_bytes * gm    # w re-read per M-tile
                          + Np * 4 * gm                     # bias per M-tile
                          + Mp * Np * out_bytes)            # output written once
        cost = pl.CostEstimate(
            flops=2 * Mp * Np * Kp,
            transcendentals=Mp * Np if self.sigmoid_output else 0,
            bytes_accessed=bytes_accessed,
        )

        def _stream_spec(shape, imap):
            if self.buffer_depth != 2:
                return pl.BlockSpec(shape, imap,
                                    pipeline_mode=pl.Buffered(self.buffer_depth))
            return pl.BlockSpec(shape, imap)

        out = pl.pallas_call(
            kernel,
            out_shape=jax.ShapeDtypeStruct((Mp, Np), out_dtype),
            grid_spec=pltpu.PrefetchScalarGridSpec(
                num_scalar_prefetch=0,
                grid=grid,
                in_specs=[
                    _stream_spec((tm, tk), lambda i, j, k: (i, k)),   # x tile
                    _stream_spec((tk, tn), lambda i, j, k: (k, j)),   # w tile
                    pl.BlockSpec((1, tn), lambda i, j, k: (0, j)),    # bias tile
                ],
                out_specs=pl.BlockSpec((tm, tn), lambda i, j, k: (i, j)),
                scratch_shapes=scratch_shapes,
            ),
            compiler_params=pltpu.CompilerParams(
                dimension_semantics=("parallel", "parallel", "arbitrary"),
                vmem_limit_bytes=vmem_limit,
            ),
            cost_estimate=cost,
        )(xk, self.wp, self.bp)

        if (Mp, Np) != (M, self.N):
            out = out[:M, :self.N]
        return out.reshape(*orig_shape[:-1], self.N)


# Convenience one-shot functional wrapper (builds the weight-stationary layer
# each call; prefer constructing SingleLinearPallas once for repeated use).
def single_linear(x, weight_t, bias, *, sigmoid_output=False, **kwargs):
    return SingleLinearPallas(weight_t, bias, sigmoid_output=sigmoid_output,
                              **kwargs)(x)


# ----------------------------------------------------------------------------
# Demo / self-test
# ----------------------------------------------------------------------------
if __name__ == "__main__":
    key = jax.random.PRNGKey(0)
    k_x, k_w, k_b, k_x2, k_w2, k_b2 = jax.random.split(key, 6)

    # --- Case 1: SingleLinear(input_dim=32, output_dim=16, sigmoid_output=True)
    input_dim, output_dim, batch = 32, 16, 8
    bound = 1.0 / (input_dim ** 0.5)
    # PyTorch weight is (output_dim, input_dim); we store its transpose.
    w_torch = jax.random.uniform(
        k_w, (output_dim, input_dim), jnp.float32, -bound, bound)
    weight_t = w_torch.T                                   # (input_dim, output_dim)
    bias = jax.random.uniform(k_b, (output_dim,), jnp.float32, -bound, bound)
    x = jax.random.normal(k_x, (batch, input_dim), jnp.float32)

    layer1 = SingleLinearPallas(weight_t, bias, sigmoid_output=True)
    y_ref = jax.nn.sigmoid(x @ weight_t + bias)

    # Tiny shape: default path uses the XLA fallback (kernel overhead dominates).
    y_fb = jax.block_until_ready(layer1(x))
    assert y_fb.shape == (batch, output_dim)
    assert jnp.allclose(y_fb, y_ref, atol=1e-5), "case 1 fallback mismatch"

    # Force the Pallas path too (bf16 MXU inputs, f32 accumulation).
    y_pl = jax.block_until_ready(layer1(x, force_pallas=True))
    assert jnp.allclose(y_pl, y_ref, atol=2e-2), "case 1 pallas mismatch"

    # --- Case 2: larger shape exercising the 3-D grid and the megacore split.
    M, K, N = 256, 768, 384
    bound2 = 1.0 / (K ** 0.5)
    w2 = jax.random.uniform(k_w2, (K, N), jnp.float32, -bound2, bound2)
    b2 = jax.random.uniform(k_b2, (N,), jnp.float32, -bound2, bound2)
    x2 = jax.random.normal(k_x2, (M, K), jnp.float32)
    y2_ref = jax.nn.sigmoid(x2 @ w2 + b2)

    # Default path: bf16 MXU inputs, f32 output accumulated in-place (no scratch).
    layer2 = SingleLinearPallas(w2, b2, sigmoid_output=True)
    y2 = jax.block_until_ready(layer2(x2))
    assert jnp.allclose(y2, y2_ref, atol=2e-2), "case 2 bf16 mismatch"

    # Exact f32 MXU path.
    layer2_f32 = SingleLinearPallas(w2, b2, sigmoid_output=True,
                                    use_bf16_matmul=False)
    y2_f32 = jax.block_until_ready(layer2_f32(x2))
    assert jnp.allclose(y2_f32, y2_ref, atol=1e-4, rtol=1e-4), "case 2 f32 mismatch"

    # bf16 output dtype: exercises the scratch-accumulator kernel variant.
    y2_b16 = jax.block_until_ready(layer2(x2.astype(jnp.bfloat16)))
    assert jnp.allclose(y2_b16.astype(jnp.float32), y2_ref, atol=4e-2), \
        "case 2 bf16-output mismatch"

    print("KERNEL_OK")
</pallas_src>

<mosaic_0001>
module attributes {stable_mosaic.version = 11 : i64} {
  func.func @_linear_kernel_inplace(%arg0: i32, %arg1: i32, %arg2: i32, %arg3: memref<16x128xbf16, #tpu.memory_space<vmem>>, %arg4: memref<128x128xbf16, #tpu.memory_space<vmem>>, %arg5: memref<1x128xf32, #tpu.memory_space<vmem>>, %arg6: memref<16x128xf32, #tpu.memory_space<vmem>>) attributes {dimension_semantics = [#tpu.dimension_semantics<parallel>, #tpu.dimension_semantics<parallel>, #tpu.dimension_semantics<arbitrary>], iteration_bounds = array<i64: 1, 1, 1>, scalar_prefetch = 0 : i64, scratch_operands = 0 : i64, tpu.core_type = #tpu.core_type<tc>, window_params = [{transform_indices = @transform_0, window_bounds = array<i64: 16, 128>}, {transform_indices = @transform_1, window_bounds = array<i64: 128, 128>}, {transform_indices = @transform_2, window_bounds = array<i64: 1, 128>}, {transform_indices = @transform_3, window_bounds = array<i64: 16, 128>}]} {
    %c0_i32 = arith.constant 0 : i32
    %0 = arith.cmpi eq, %arg2, %c0_i32 : i32
    %1 = arith.extui %0 : i1 to i32
    %c0_i32_0 = arith.constant 0 : i32
    %2 = arith.cmpi ne, %1, %c0_i32_0 : i32
    scf.if %2 {
      %cst_10 = arith.constant 0.000000e+00 : f32
      %12 = vector.broadcast %cst_10 : f32 to vector<16x128xf32>
      %c0_11 = arith.constant 0 : index
      %c0_12 = arith.constant 0 : index
      %13 = vector.load %arg6[%c0_11, %c0_12] : memref<16x128xf32, #tpu.memory_space<vmem>>, vector<16x128xf32>
      tpu.vector_store %arg6[%c0_11, %c0_12], %12 {strides = array<i32>} : memref<16x128xf32, #tpu.memory_space<vmem>>, vector<16x128xf32>,
    } else {
    }
    %c0 = arith.constant 0 : index
    %c0_1 = arith.constant 0 : index
    %3 = vector.load %arg6[%c0, %c0_1] : memref<16x128xf32, #tpu.memory_space<vmem>>, vector<16x128xf32>
    %c0_2 = arith.constant 0 : index
    %c0_3 = arith.constant 0 : index
    %4 = vector.load %arg3[%c0_2, %c0_3] : memref<16x128xbf16, #tpu.memory_space<vmem>>, vector<16x128xbf16>
    %c0_4 = arith.constant 0 : index
    %c0_5 = arith.constant 0 : index
    %5 = vector.load %arg4[%c0_4, %c0_5] : memref<128x128xbf16, #tpu.memory_space<vmem>>, vector<128x128xbf16>
    %cst = arith.constant dense<0.000000e+00> : vector<16x128xf32>
    %6 = tpu.matmul %4, %5, %cst {dimension_numbers = #tpu.dot_dimension_numbers<[1], [0], [0], [1], [0, 0, 1, 1], [], []>} : vector<16x128xbf16>, vector<128x128xbf16>, vector<16x128xf32> -> vector<16x128xf32>
    %7 = arith.addf %3, %6 : vector<16x128xf32>
    %c0_6 = arith.constant 0 : index
    %c0_7 = arith.constant 0 : index
    %8 = vector.load %arg6[%c0_6, %c0_7] : memref<16x128xf32, #tpu.memory_space<vmem>>, vector<16x128xf32>
    tpu.vector_store %arg6[%c0_6, %c0_7], %7 {strides = array<i32>} : memref<16x128xf32, #tpu.memory_space<vmem>>, vector<16x128xf32>,
    %c0_i32_8 = arith.constant 0 : i32
    %9 = arith.cmpi eq, %arg2, %c0_i32_8 : i32
    %10 = arith.extui %9 : i1 to i32
    %c0_i32_9 = arith.constant 0 : i32
    %11 = arith.cmpi ne, %10, %c0_i32_9 : i32
    scf.if %11 {
      %c0_10 = arith.constant 0 : index
      %c0_11 = arith.constant 0 : index
      %12 = vector.load %arg6[%c0_10, %c0_11] : memref<16x128xf32, #tpu.memory_space<vmem>>, vector<16x128xf32>
      %c0_12 = arith.constant 0 : index
      %c0_13 = arith.constant 0 : index
      %13 = vector.load %arg5[%c0_12, %c0_13] : memref<1x128xf32, #tpu.memory_space<vmem>>, vector<1x128xf32>
      %14 = vector.broadcast %13 : vector<1x128xf32> to vector<16x128xf32>
      %15 = arith.addf %12, %14 : vector<16x128xf32>
      %16 = arith.negf %15 : vector<16x128xf32>
      %17 = math.exp %16 : vector<16x128xf32>
      %cst_14 = arith.constant 1.000000e+00 : f32
      %18 = vector.broadcast %cst_14 : f32 to vector<16x128xf32>
      %19 = arith.addf %18, %17 : vector<16x128xf32>
      %20 = arith.divf %18, %19 : vector<16x128xf32>
      %c0_15 = arith.constant 0 : index
      %c0_16 = arith.constant 0 : index
      %21 = vector.load %arg6[%c0_15, %c0_16] : memref<16x128xf32, #tpu.memory_space<vmem>>, vector<16x128xf32>
      tpu.vector_store %arg6[%c0_15, %c0_16], %20 {strides = array<i32>} : memref<16x128xf32, #tpu.memory_space<vmem>>, vector<16x128xf32>,
    } else {
    }
    return
  }
  func.func @transform_0(%arg0: i32, %arg1: i32, %arg2: i32) -> (i32, i32) {
    %c0_i32 = arith.constant 0 : i32
    return %arg0, %arg2 : i32, i32
  }
  func.func @transform_1(%arg0: i32, %arg1: i32, %arg2: i32) -> (i32, i32) {
    %c0_i32 = arith.constant 0 : i32
    return %arg2, %arg1 : i32, i32
  }
  func.func @transform_2(%arg0: i32, %arg1: i32, %arg2: i32) -> (i32, i32) {
    %c0_i32 = arith.constant 0 : i32
    %c0_i32_0 = arith.constant 0 : i32
    return %c0_i32, %arg1 : i32, i32
  }
  func.func @transform_3(%arg0: i32, %arg1: i32, %arg2: i32) -> (i32, i32) {
    %c0_i32 = arith.constant 0 : i32
    return %arg0, %arg1 : i32, i32
  }
}

</mosaic_0001>

<bundles_post_ra>
// kernel: tpu_custom_call.1
= control target key start
LH: loop header
LB: loop body
LE: loop exit
PB: predicated region body
PF: predicated region fallthrough
CT: control target
= control target key end

     0   :  { %8 = vsyncpa [#allocation3], 0  ;;  %s422_s0 = inlined_call_operand.hbm [shape: bf16[16,128], index: 0, kind: input, shape index: {}]   ;;  %s423_s1 = inlined_call_operand.hbm [shape: bf16[128,128], index: 1, kind: input, shape index: {}]   ;;  %s424_s2 = inlined_call_operand.vmem [shape: f32[1,128], index: 2, kind: input, shape index: {}]   ;;  %s425_s3 = inlined_call_operand.hbm [shape: f32[16,128], index: 3, kind: output, shape index: {}]  }
   0x1   :  { %9 = vsyncpa [#allocation6], 0 }
   0x2   :  { %10 = vsyncpa [#allocation4], 0  ;;  %s354_s12 = smov [#allocation2]   ;;  %s282_s16 = scalar_lea.hbm %s422_s0, 128 }
   0x3   :  { %s16_s13 = sshll.u32 %s354_s12, 4  ;;  %p283_p0 = scmp.ne.s32.totalorder %s422_s0, %s282_s16  ;;  %s17_s13 = int_to_ptr.vmem [resolvable:$true] %s16_s13 }
   0x4   :  { %p286_p1 = scmp.lt.u32.totalorder %s282_s16, %s422_s0 }
   0x6   :  { %p288_p2 = pnand %p286_p1, %p283_p0 }
   0x8   :  { %291 = shalt.err (!%p288_p2)
}
   0x9   :  { %s292_s21 = scalar_lea.vmem %s17_s13, 128  ;;  %p297_p4 = scmp.lt.s32.totalorder %s17_s13, %s17_s13 }
   0xa   :  { %p293_p3 = scmp.ne.s32.totalorder %s17_s13, %s292_s21  ;;  %p298_p5 = scmp.lt.s32.totalorder %s292_s21, %s292_s21 }
   0xc   :  { %p299_p6 = por %p298_p5, %p297_p4 }
   0xe   :  { %p300_p7 = pnand %p299_p6, %p293_p3 }
  0x10   :  { %303 = shalt.err (!%p300_p7)
}
  0x11   :  { %s355_s22 = smov 64   ;;  %s356_s23 = smov 4  }
  0x12   :  { %22 = dma.hbm_to_vmem [thread:$0]  %s422_s0, 128, %s17_s13, [#allocation3], %s355_s22, %s355_s22, %s356_s23  }
  0x13   :  { %s357_s26 = smov [#allocation5]   ;;  %s304_s30 = scalar_lea.hbm %s423_s1, 1024 }
  0x14   :  { %s28_s27 = sshll.u32 %s357_s26, 4  ;;  %p305_p8 = scmp.ne.s32.totalorder %s423_s1, %s304_s30  ;;  %s29_s27 = int_to_ptr.vmem [resolvable:$true] %s28_s27 }
  0x15   :  { %p308_p9 = scmp.lt.u32.totalorder %s304_s30, %s423_s1 }
  0x17   :  { %p310_p10 = pnand %p308_p9, %p305_p8 }
  0x19   :  { %313 = shalt.err (!%p310_p10)
}
  0x1a   :  { %s314_s8 = scalar_lea.vmem %s29_s27, 1024  ;;  %p319_p12 = scmp.lt.s32.totalorder %s29_s27, %s29_s27 }
  0x1b   :  { %p315_p11 = scmp.ne.s32.totalorder %s29_s27, %s314_s8  ;;  %p320_p13 = scmp.lt.s32.totalorder %s314_s8, %s314_s8 }
  0x1d   :  { %p321_p0 = por %p320_p13, %p319_p12 }
  0x1f   :  { %p322_p1 = pnand %p321_p0, %p315_p11 }
  0x21   :  { %325 = shalt.err (!%p322_p1)
}
  0x22   :  { %34 = dma.hbm_to_vmem [thread:$0]  %s423_s1, 1024, %s29_s27, [#allocation6], %s355_s22, %s355_s22, %s356_s23  }
  0x23   :  { %348 = dma.done.wait [#allocation3], 128  }
  0x24   :  { %349 = vsyncadd [#allocation3], 4294967168 }
  0x25   :  { %350 = dma.done.wait [#allocation6], 1024  }
  0x26   :  { %351 = vsyncadd [#allocation6], 4294966272  ;;  %v358_v0 = vmov 0.0   ;;  %vm359_vm0 = vmmov 0   ;;  %v265_v1 = vld [vmem:[#allocation5] sm:$0xff]   ;;  %v266_v2 = vld [vmem:[#allocation5 + $0x8] sm:$0xff]  }
  0x27   :  { %236 = vmatprep.subr.bf16.mxu0 %v358_v0  ;;  %252 = vmatprep.mubr.msk.bf16.mxu0 %vm359_vm0, %v358_v0  ;;  %v267_v3 = vld [vmem:[#allocation5 + $0x10] sm:$0xff]   ;;  %v268_v4 = vld [vmem:[#allocation5 + $0x18] sm:$0xff]   ;;  %v269_v5 = vld [vmem:[#allocation5 + $0x20] sm:$0xff]   ;;  %s360_s11 = smov [#allocation7]  }
  0x28   :  { %237 = vmatpush3.bf16.msra.mxu0 %v265_v1  ;;  %v270_v6 = vld [vmem:[#allocation5 + $0x28] sm:$0xff]   ;;  %v271_v7 = vld [vmem:[#allocation5 + $0x30] sm:$0xff]   ;;  %v272_v8 = vld [vmem:[#allocation5 + $0x38] sm:$0xff]   ;;  %s202_s12 = sshll.u32 %s360_s11, 4  ;;  %s203_s12 = int_to_ptr.vmem [resolvable:$true] %s202_s12 }
  0x29   :  { %238 = vmatprep.subr.bf16.mxu0 %v358_v0  ;;  %v273_v9 = vld [vmem:[#allocation2] sm:$0xff]   ;;  %p331_p3 = scmp.lt.s32.totalorder %s203_s12, %s203_s12 }
  0x2a   :  { %v224_v11 = vld [vmem:[%s424_s2] ss:$0 sm:$0xff]  ;;  %s326_s2 = scalar_lea.vmem %s203_s12, 256 }
  0x2b   :  { %p327_p2 = scmp.ne.s32.totalorder %s203_s12, %s326_s2  ;;  %p332_p4 = scmp.lt.s32.totalorder %s326_s2, %s326_s2 }
  0x2c   :  { %239 = vmatpush3.bf16.msra.mxu0 %v266_v2 }
  0x2d   :  { %240 = vmatprep.subr.bf16.mxu0 %v358_v0  ;;  %p333_p5 = por %p332_p4, %p331_p3 }
  0x2f   :  { %p334_p6 = pnand %p333_p5, %p327_p2 }
  0x30   :  { %241 = vmatpush3.bf16.msra.mxu0 %v267_v3 }
  0x31   :  { %242 = vmatprep.subr.bf16.mxu0 %v358_v0 }
  0x34   :  { %243 = vmatpush3.bf16.msra.mxu0 %v268_v4 }
  0x35   :  { %244 = vmatprep.subr.bf16.mxu0 %v358_v0 }
  0x38   :  { %245 = vmatpush3.bf16.msra.mxu0 %v269_v5 }
  0x39   :  { %246 = vmatprep.subr.bf16.mxu0 %v358_v0 }
  0x3c   :  { %247 = vmatpush3.bf16.msra.mxu0 %v270_v6 }
  0x3d   :  { %248 = vmatprep.subr.bf16.mxu0 %v358_v0 }
  0x40   :  { %249 = vmatpush3.bf16.msra.mxu0 %v271_v7 }
  0x41   :  { %250 = vmatprep.subr.bf16.mxu0 %v358_v0 }
  0x44   :  { %251 = vmatpush3.bf16.msra.mxu0 %v272_v8 }
  0x47   :  { %253 = vmatmul.mubr.bf16.vlgmr.msra.gmra.mrb[0].mxu0 %v273_v9 }
 0x11a   :  { %v158_v10 = vpop.f32.mrb[0].mxu0 }
 0x11b   :  { %v254_v12 = vpop.f32.mrb[1].mxu0  ;;  %v181_v15 = vadd.f32 %v224_v11, %v158_v10 }
 0x11c   :  { %v161_v13 = vpop.f32.mrb[2].mxu0 }
 0x11d   :  { %v255_v14 = vpop.f32.mrb[3].mxu0  ;;  %v182_v16 = vadd.f32 %v224_v11, %v161_v13  ;;  %v225_v17 = vmul.f32 -1.442695, %v181_v15 }
 0x11f   :  { %274 = vpow2.f32 %v225_v17  ;;  %v226_v18 = vmul.f32 -1.442695, %v182_v16 }
 0x121   :  { %276 = vpow2.f32 %v226_v18 }
 0x129   :  { %v275_v19 = vpop.eup %274 }
 0x12a   :  { %v189_v20 = vadd.f32 1.0, %v275_v19 }
 0x12b   :  { %v277_v21 = vpop.eup %276 }
 0x12c   :  { %v190_v22 = vadd.f32 1.0, %v277_v21  ;;  %278 = vrcp.f32 %v189_v20 }
 0x12e   :  { %280 = vrcp.f32 %v190_v22 }
 0x136   :  { %v279_v23 = vpop.eup %278 }
 0x137   :  { %195 = vst [vmem:[#allocation7] sm:$0xff] %v279_v23 }
 0x138   :  { %v281_v24 = vpop.eup %280 }
 0x139   :  { %196 = vst [vmem:[#allocation7 + $0x8] sm:$0xff] %v281_v24 }
 0x13a   :  { %337 = shalt.err (!%p334_p6)
}
 0x13b   :  { %s338_s15 = scalar_lea.hbm %s425_s3, 256 }
 0x13c   :  { %p339_p7 = scmp.ne.s32.totalorder %s425_s3, %s338_s15  ;;  %p342_p8 = scmp.lt.u32.totalorder %s338_s15, %s425_s3 }
 0x13e   :  { %p344_p9 = pnand %p342_p8, %p339_p7 }
 0x140   :  { %347 = shalt.err (!%p344_p9)
}
 0x141   :  { %s361_s20 = smov 128   ;;  %s362_s21 = smov 8  }
 0x142   :  { %208 = dma.vmem_to_hbm [thread:$0]  %s203_s12, 256, %s425_s3, [#allocation4], %s361_s20, %s361_s20, %s362_s21  }
 0x143   :  { %352 = dma.done.wait [#allocation4], 256  }
 0x144   :  { %353 = vsyncadd [#allocation4], 4294967040 }
 0x145   :  { %212 = vsyncpa [#allocation3], 1 }
 0x146   :  { %213 = vsyncpa [#allocation6], 1 }
 0x147   :  { %214 = vsyncpa [#allocation4], 1 }

</bundles_post_ra>
